<compile_context>
chip_gen: v6e
topology: v6e:2x2x1
jax: 0.10.0
libtpu: 0.0.40
codegen_flags: <defaults>
</compile_context>

<pallas_src>
import jax
import jax.numpy as jnp
from jax.experimental import pallas as pl
from jax.experimental.pallas import tpu as pltpu

SUBLANE = 8


def _round_up(x, m):
    return ((x + m - 1) // m) * m


def mlp_kernel(x1_ref, x2_ref,
               w0a_ref, w0b_ref, b0_ref,
               w1a_ref, b1a_ref, w1b_ref, b1b_ref,
               w2a_ref, b2a_ref, w2b_ref, b2b_ref,
               w3_ref, b3_ref,
               out_ref):
    f32 = jnp.float32

    def dot(a, w_ref):
        # MXU matmul: operands in the weights' dtype (f32 or bf16), f32 accum.
        return jnp.dot(a.astype(w_ref.dtype), w_ref[...],
                       preferred_element_type=f32)

    # Layer 0: Linear(2*in -> H) as a split-K matmul over the (x1, x2) concat.
    h = dot(x1_ref[...], w0a_ref) + dot(x2_ref[...], w0b_ref) + b0_ref[...]

    # ResLayer 1: relu(lin2(relu(lin1(h)))) + h   (elementwise stays f32)
    t = jnp.maximum(dot(h, w1a_ref) + b1a_ref[...], 0.0)
    t = jnp.maximum(dot(t, w1b_ref) + b1b_ref[...], 0.0)
    h = t + h

    # ResLayer 2
    t = jnp.maximum(dot(h, w2a_ref) + b2a_ref[...], 0.0)
    t = jnp.maximum(dot(t, w2b_ref) + b2b_ref[...], 0.0)
    h = t + h

    # Final Linear(H -> out), stored at the true output width (no lane pad).
    out_ref[...] = (dot(h, w3_ref) + b3_ref[...]).astype(out_ref.dtype)


def _vmem_capacity_bytes():
    try:
        cap = getattr(pltpu.get_tpu_info(), "vmem_capacity_bytes", None)
        if cap:
            return int(cap)
    except Exception:
        pass
    return 64 << 20   # conservative fallback: v7x has 64 MiB per TensorCore


def mlp_forward(x1, x2, params, *, batch_tile=1024, matmul_dtype=jnp.bfloat16):
    """Forward pass matching MLP(x1, x2) of the PyTorch module.

    params: weights in [in_features, out_features] layout (transposed vs
    PyTorch), biases as [1, n] (or [n]).
    """
    B, in1 = x1.shape
    in2 = x2.shape[1]
    H = params["w0"].shape[1]
    O = params["w3"].shape[1]
    mdt = jnp.dtype(matmul_dtype)

    # ---- batch tiling: >= 2 grid steps when the batch allows it, so both ----
    # ---- v7x TensorCores get a step under dimension_semantics=parallel.  ----
    if B < 2 * SUBLANE:
        n_tiles = 1
    else:
        n_tiles = max(2, pl.cdiv(B, batch_tile))
    TB = _round_up(pl.cdiv(B, n_tiles), SUBLANE)
    Bp = TB * n_tiles

    def prep_x(a):
        a = a.astype(mdt)
        if Bp > a.shape[0]:
            a = jnp.pad(a, ((0, Bp - a.shape[0]), (0, 0)))
        return a

    def w(a):
        return a.astype(mdt)

    def bias(a):
        # 2D [1, n] f32 so biases broadcast cleanly over batch sublanes.
        return a.reshape(1, -1).astype(jnp.float32)

    x1p, x2p = prep_x(x1), prep_x(x2)
    w0 = params["w0"]
    weight_args = [
        w(w0[:in1]), w(w0[in1:]), bias(params["b0"]),
        w(params["w1a"]), bias(params["b1a"]),
        w(params["w1b"]), bias(params["b1b"]),
        w(params["w2a"]), bias(params["b2a"]),
        w(params["w2b"]), bias(params["b2b"]),
        w(params["w3"]), bias(params["b3"]),
    ]

    def resident_spec(a):
        # Constant block index -> stays VMEM-resident across grid steps.
        return pl.BlockSpec(a.shape, lambda i: (0, 0))

    in_specs = ([pl.BlockSpec((TB, in1), lambda i: (i, 0)),
                 pl.BlockSpec((TB, in2), lambda i: (i, 0))]
                + [resident_spec(a) for a in weight_args])
    out_specs = pl.BlockSpec((TB, O), lambda i: (i, 0))

    # Advisory cost estimate (true, unpadded feature dims).
    flops = 2 * Bp * ((in1 + in2) * H + 4 * H * H + H * O)
    x_bytes = (int(x1p.size) + int(x2p.size)) * mdt.itemsize
    weight_bytes = sum(int(a.size) * a.dtype.itemsize for a in weight_args)
    out_bytes = Bp * O * 4

    # VMEM budget: double-buffered activation tiles + (conservatively 2x)
    # resident weights + live h/t intermediates, capped at 85% of physical VMEM.
    cap = _vmem_capacity_bytes()
    act_bytes = 2 * (TB * (in1 + in2) * mdt.itemsize + TB * O * 4)
    live_bytes = TB * max(H, O, in1 + in2) * (2 * 4 + 2 * mdt.itemsize)
    vmem_budget = act_bytes + 2 * weight_bytes + live_bytes + (4 << 20)
    vmem_limit = int(min(max(vmem_budget, 32 << 20), int(0.85 * cap)))

    out = pl.pallas_call(
        mlp_kernel,
        out_shape=jax.ShapeDtypeStruct((Bp, O), jnp.float32),
        grid=(n_tiles,),
        in_specs=in_specs,
        out_specs=out_specs,
        compiler_params=pltpu.CompilerParams(
            dimension_semantics=("parallel",),
            vmem_limit_bytes=vmem_limit,
        ),
        cost_estimate=pl.CostEstimate(
            flops=flops, transcendentals=0,
            bytes_accessed=int(x_bytes + weight_bytes + out_bytes)),
    )(x1p, x2p, *weight_args)

    return out[:B]


def init_params(key, input_size, output_size, hidden_size=None):
    if hidden_size is None:
        hidden_size = input_size
    ks = jax.random.split(key, 12)
    s = 0.1

    def w(k, shape):
        return (s * jax.random.normal(k, shape)).astype(jnp.float32)

    def b(k, n):
        return (s * jax.random.normal(k, (1, n))).astype(jnp.float32)

    return {
        "w0": w(ks[0], (2 * input_size, hidden_size)), "b0": b(ks[1], hidden_size),
        "w1a": w(ks[2], (hidden_size, hidden_size)), "b1a": b(ks[3], hidden_size),
        "w1b": w(ks[4], (hidden_size, hidden_size)), "b1b": b(ks[5], hidden_size),
        "w2a": w(ks[6], (hidden_size, hidden_size)), "b2a": b(ks[7], hidden_size),
        "w2b": w(ks[8], (hidden_size, hidden_size)), "b2b": b(ks[9], hidden_size),
        "w3": w(ks[10], (hidden_size, output_size)), "b3": b(ks[11], output_size),
    }


def mlp_reference(x1, x2, p):
    """Pure-JAX f32 reference matching the PyTorch forward exactly."""
    x = jnp.concatenate([x1, x2], axis=-1)
    h = x @ p["w0"] + p["b0"]
    t = jax.nn.relu(h @ p["w1a"] + p["b1a"])
    t = jax.nn.relu(t @ p["w1b"] + p["b1b"])
    h = t + h
    t = jax.nn.relu(h @ p["w2a"] + p["b2a"])
    t = jax.nn.relu(t @ p["w2b"] + p["b2b"])
    h = t + h
    return h @ p["w3"] + p["b3"]


if __name__ == "__main__":
    key = jax.random.PRNGKey(0)
    k_params, k_x1, k_x2, k_params2, k_y1, k_y2 = jax.random.split(key, 6)

    # --- Test 1: tiny shapes matching the module defaults (hidden = input). ---
    batch, input_size, output_size = 8, 16, 8
    params = init_params(k_params, input_size, output_size, hidden_size=None)
    x1 = jax.random.normal(k_x1, (batch, input_size), dtype=jnp.float32)
    x2 = jax.random.normal(k_x2, (batch, input_size), dtype=jnp.float32)
    ref = mlp_reference(x1, x2, params)

    # f32 MXU mode -> tight numerical check against the reference.
    out_f32 = jax.block_until_ready(
        mlp_forward(x1, x2, params, matmul_dtype=jnp.float32))
    assert out_f32.shape == (batch, output_size)
    assert jnp.allclose(out_f32, ref, atol=1e-5, rtol=1e-5), \
        float(jnp.abs(out_f32 - ref).max())

    # Default bf16-operand mode -> loose check (expected small numeric drift).
    out_bf16 = jax.block_until_ready(mlp_forward(x1, x2, params))
    assert out_bf16.shape == (batch, output_size)
    assert jnp.allclose(out_bf16, ref, atol=5e-2, rtol=5e-2), \
        float(jnp.abs(out_bf16 - ref).max())

    # --- Test 2: batch spanning multiple grid steps + batch-row padding. ---
    batch2, in2, out2, hid2 = 300, 16, 8, 64
    params2 = init_params(k_params2, in2, out2, hidden_size=hid2)
    y1 = jax.random.normal(k_y1, (batch2, in2), dtype=jnp.float32)
    y2 = jax.random.normal(k_y2, (batch2, in2), dtype=jnp.float32)
    ref2 = mlp_reference(y1, y2, params2)

    out2_f32 = jax.block_until_ready(
        mlp_forward(y1, y2, params2, batch_tile=128, matmul_dtype=jnp.float32))
    assert out2_f32.shape == (batch2, out2)
    assert jnp.allclose(out2_f32, ref2, atol=1e-5, rtol=1e-5), \
        float(jnp.abs(out2_f32 - ref2).max())

    out2_bf16 = jax.block_until_ready(mlp_forward(y1, y2, params2))
    assert out2_bf16.shape == (batch2, out2)
    assert jnp.allclose(out2_bf16, ref2, atol=5e-2, rtol=5e-2), \
        float(jnp.abs(out2_bf16 - ref2).max())

    print("KERNEL_OK")
</pallas_src>

<mosaic_0001>
module attributes {stable_mosaic.version = 11 : i64} {
  func.func @mlp_kernel(%arg0: i32, %arg1: memref<8x16xf32, #tpu.memory_space<vmem>>, %arg2: memref<8x16xf32, #tpu.memory_space<vmem>>, %arg3: memref<16x16xf32, #tpu.memory_space<vmem>>, %arg4: memref<16x16xf32, #tpu.memory_space<vmem>>, %arg5: memref<1x16xf32, #tpu.memory_space<vmem>>, %arg6: memref<16x16xf32, #tpu.memory_space<vmem>>, %arg7: memref<1x16xf32, #tpu.memory_space<vmem>>, %arg8: memref<16x16xf32, #tpu.memory_space<vmem>>, %arg9: memref<1x16xf32, #tpu.memory_space<vmem>>, %arg10: memref<16x16xf32, #tpu.memory_space<vmem>>, %arg11: memref<1x16xf32, #tpu.memory_space<vmem>>, %arg12: memref<16x16xf32, #tpu.memory_space<vmem>>, %arg13: memref<1x16xf32, #tpu.memory_space<vmem>>, %arg14: memref<16x8xf32, #tpu.memory_space<vmem>>, %arg15: memref<1x8xf32, #tpu.memory_space<vmem>>, %arg16: memref<8x8xf32, #tpu.memory_space<vmem>>) attributes {dimension_semantics = [#tpu.dimension_semantics<parallel>], iteration_bounds = array<i64: 1>, scalar_prefetch = 0 : i64, scratch_operands = 0 : i64, tpu.core_type = #tpu.core_type<tc>, window_params = [{transform_indices = @transform_0, window_bounds = array<i64: 8, 16>}, {transform_indices = @transform_1, window_bounds = array<i64: 8, 16>}, {pipeline_mode = #tpu.pipeline_mode<synchronous>, transform_indices = @transform_2, window_bounds = array<i64: 16, 16>}, {pipeline_mode = #tpu.pipeline_mode<synchronous>, transform_indices = @transform_3, window_bounds = array<i64: 16, 16>}, {pipeline_mode = #tpu.pipeline_mode<synchronous>, transform_indices = @transform_4, window_bounds = array<i64: 1, 16>}, {pipeline_mode = #tpu.pipeline_mode<synchronous>, transform_indices = @transform_5, window_bounds = array<i64: 16, 16>}, {pipeline_mode = #tpu.pipeline_mode<synchronous>, transform_indices = @transform_6, window_bounds = array<i64: 1, 16>}, {pipeline_mode = #tpu.pipeline_mode<synchronous>, transform_indices = @transform_7, window_bounds = array<i64: 16, 16>}, {pipeline_mode = #tpu.pipeline_mode<synchronous>, transform_indices = @transform_8, window_bounds = array<i64: 1, 16>}, {pipeline_mode = #tpu.pipeline_mode<synchronous>, transform_indices = @transform_9, window_bounds = array<i64: 16, 16>}, {pipeline_mode = #tpu.pipeline_mode<synchronous>, transform_indices = @transform_10, window_bounds = array<i64: 1, 16>}, {pipeline_mode = #tpu.pipeline_mode<synchronous>, transform_indices = @transform_11, window_bounds = array<i64: 16, 16>}, {pipeline_mode = #tpu.pipeline_mode<synchronous>, transform_indices = @transform_12, window_bounds = array<i64: 1, 16>}, {pipeline_mode = #tpu.pipeline_mode<synchronous>, transform_indices = @transform_13, window_bounds = array<i64: 16, 8>}, {pipeline_mode = #tpu.pipeline_mode<synchronous>, transform_indices = @transform_14, window_bounds = array<i64: 1, 8>}, {transform_indices = @transform_15, window_bounds = array<i64: 8, 8>}]} {
    %c0 = arith.constant 0 : index
    %c0_0 = arith.constant 0 : index
    %0 = vector.load %arg1[%c0, %c0_0] : memref<8x16xf32, #tpu.memory_space<vmem>>, vector<8x16xf32>
    %c0_1 = arith.constant 0 : index
    %c0_2 = arith.constant 0 : index
    %1 = vector.load %arg3[%c0_1, %c0_2] : memref<16x16xf32, #tpu.memory_space<vmem>>, vector<16x16xf32>
    %cst = arith.constant dense<0.000000e+00> : vector<8x16xf32>
    %2 = tpu.matmul %0, %1, %cst {dimension_numbers = #tpu.dot_dimension_numbers<[1], [0], [0], [1], [0, 0, 1, 1], [], []>} : vector<8x16xf32>, vector<16x16xf32>, vector<8x16xf32> -> vector<8x16xf32>
    %c0_3 = arith.constant 0 : index
    %c0_4 = arith.constant 0 : index
    %3 = vector.load %arg2[%c0_3, %c0_4] : memref<8x16xf32, #tpu.memory_space<vmem>>, vector<8x16xf32>
    %c0_5 = arith.constant 0 : index
    %c0_6 = arith.constant 0 : index
    %4 = vector.load %arg4[%c0_5, %c0_6] : memref<16x16xf32, #tpu.memory_space<vmem>>, vector<16x16xf32>
    %cst_7 = arith.constant dense<0.000000e+00> : vector<8x16xf32>
    %5 = tpu.matmul %3, %4, %cst_7 {dimension_numbers = #tpu.dot_dimension_numbers<[1], [0], [0], [1], [0, 0, 1, 1], [], []>} : vector<8x16xf32>, vector<16x16xf32>, vector<8x16xf32> -> vector<8x16xf32>
    %6 = arith.addf %2, %5 : vector<8x16xf32>
    %c0_8 = arith.constant 0 : index
    %c0_9 = arith.constant 0 : index
    %7 = vector.load %arg5[%c0_8, %c0_9] : memref<1x16xf32, #tpu.memory_space<vmem>>, vector<1x16xf32>
    %8 = vector.broadcast %7 : vector<1x16xf32> to vector<8x16xf32>
    %9 = arith.addf %6, %8 : vector<8x16xf32>
    %c0_10 = arith.constant 0 : index
    %c0_11 = arith.constant 0 : index
    %10 = vector.load %arg6[%c0_10, %c0_11] : memref<16x16xf32, #tpu.memory_space<vmem>>, vector<16x16xf32>
    %cst_12 = arith.constant dense<0.000000e+00> : vector<8x16xf32>
    %11 = tpu.matmul %9, %10, %cst_12 {dimension_numbers = #tpu.dot_dimension_numbers<[1], [0], [0], [1], [0, 0, 1, 1], [], []>} : vector<8x16xf32>, vector<16x16xf32>, vector<8x16xf32> -> vector<8x16xf32>
    %c0_13 = arith.constant 0 : index
    %c0_14 = arith.constant 0 : index
    %12 = vector.load %arg7[%c0_13, %c0_14] : memref<1x16xf32, #tpu.memory_space<vmem>>, vector<1x16xf32>
    %13 = vector.broadcast %12 : vector<1x16xf32> to vector<8x16xf32>
    %14 = arith.addf %11, %13 : vector<8x16xf32>
    %cst_15 = arith.constant 0.000000e+00 : f32
    %15 = vector.broadcast %cst_15 : f32 to vector<8x16xf32>
    %16 = arith.maximumf %14, %15 : vector<8x16xf32>
    %c0_16 = arith.constant 0 : index
    %c0_17 = arith.constant 0 : index
    %17 = vector.load %arg8[%c0_16, %c0_17] : memref<16x16xf32, #tpu.memory_space<vmem>>, vector<16x16xf32>
    %cst_18 = arith.constant dense<0.000000e+00> : vector<8x16xf32>
    %18 = tpu.matmul %16, %17, %cst_18 {dimension_numbers = #tpu.dot_dimension_numbers<[1], [0], [0], [1], [0, 0, 1, 1], [], []>} : vector<8x16xf32>, vector<16x16xf32>, vector<8x16xf32> -> vector<8x16xf32>
    %c0_19 = arith.constant 0 : index
    %c0_20 = arith.constant 0 : index
    %19 = vector.load %arg9[%c0_19, %c0_20] : memref<1x16xf32, #tpu.memory_space<vmem>>, vector<1x16xf32>
    %20 = vector.broadcast %19 : vector<1x16xf32> to vector<8x16xf32>
    %21 = arith.addf %18, %20 : vector<8x16xf32>
    %cst_21 = arith.constant 0.000000e+00 : f32
    %22 = vector.broadcast %cst_21 : f32 to vector<8x16xf32>
    %23 = arith.maximumf %21, %22 : vector<8x16xf32>
    %24 = arith.addf %23, %9 : vector<8x16xf32>
    %c0_22 = arith.constant 0 : index
    %c0_23 = arith.constant 0 : index
    %25 = vector.load %arg10[%c0_22, %c0_23] : memref<16x16xf32, #tpu.memory_space<vmem>>, vector<16x16xf32>
    %cst_24 = arith.constant dense<0.000000e+00> : vector<8x16xf32>
    %26 = tpu.matmul %24, %25, %cst_24 {dimension_numbers = #tpu.dot_dimension_numbers<[1], [0], [0], [1], [0, 0, 1, 1], [], []>} : vector<8x16xf32>, vector<16x16xf32>, vector<8x16xf32> -> vector<8x16xf32>
    %c0_25 = arith.constant 0 : index
    %c0_26 = arith.constant 0 : index
    %27 = vector.load %arg11[%c0_25, %c0_26] : memref<1x16xf32, #tpu.memory_space<vmem>>, vector<1x16xf32>
    %28 = vector.broadcast %27 : vector<1x16xf32> to vector<8x16xf32>
    %29 = arith.addf %26, %28 : vector<8x16xf32>
    %cst_27 = arith.constant 0.000000e+00 : f32
    %30 = vector.broadcast %cst_27 : f32 to vector<8x16xf32>
    %31 = arith.maximumf %29, %30 : vector<8x16xf32>
    %c0_28 = arith.constant 0 : index
    %c0_29 = arith.constant 0 : index
    %32 = vector.load %arg12[%c0_28, %c0_29] : memref<16x16xf32, #tpu.memory_space<vmem>>, vector<16x16xf32>
    %cst_30 = arith.constant dense<0.000000e+00> : vector<8x16xf32>
    %33 = tpu.matmul %31, %32, %cst_30 {dimension_numbers = #tpu.dot_dimension_numbers<[1], [0], [0], [1], [0, 0, 1, 1], [], []>} : vector<8x16xf32>, vector<16x16xf32>, vector<8x16xf32> -> vector<8x16xf32>
    %c0_31 = arith.constant 0 : index
    %c0_32 = arith.constant 0 : index
    %34 = vector.load %arg13[%c0_31, %c0_32] : memref<1x16xf32, #tpu.memory_space<vmem>>, vector<1x16xf32>
    %35 = vector.broadcast %34 : vector<1x16xf32> to vector<8x16xf32>
    %36 = arith.addf %33, %35 : vector<8x16xf32>
    %cst_33 = arith.constant 0.000000e+00 : f32
    %37 = vector.broadcast %cst_33 : f32 to vector<8x16xf32>
    %38 = arith.maximumf %36, %37 : vector<8x16xf32>
    %39 = arith.addf %38, %24 : vector<8x16xf32>
    %c0_34 = arith.constant 0 : index
    %c0_35 = arith.constant 0 : index
    %40 = vector.load %arg14[%c0_34, %c0_35] : memref<16x8xf32, #tpu.memory_space<vmem>>, vector<16x8xf32>
    %cst_36 = arith.constant dense<0.000000e+00> : vector<8x8xf32>
    %41 = tpu.matmul %39, %40, %cst_36 {dimension_numbers = #tpu.dot_dimension_numbers<[1], [0], [0], [1], [0, 0, 1, 1], [], []>} : vector<8x16xf32>, vector<16x8xf32>, vector<8x8xf32> -> vector<8x8xf32>
    %c0_37 = arith.constant 0 : index
    %c0_38 = arith.constant 0 : index
    %42 = vector.load %arg15[%c0_37, %c0_38] : memref<1x8xf32, #tpu.memory_space<vmem>>, vector<1x8xf32>
    %43 = vector.broadcast %42 : vector<1x8xf32> to vector<8x8xf32>
    %44 = arith.addf %41, %43 : vector<8x8xf32>
    %c0_39 = arith.constant 0 : index
    %c0_40 = arith.constant 0 : index
    %45 = vector.load %arg16[%c0_39, %c0_40] : memref<8x8xf32, #tpu.memory_space<vmem>>, vector<8x8xf32>
    tpu.vector_store %arg16[%c0_39, %c0_40], %44 {strides = array<i32>} : memref<8x8xf32, #tpu.memory_space<vmem>>, vector<8x8xf32>,
    return
  }
  func.func @transform_0(%arg0: i32) -> (i32, i32) {
    %c0_i32 = arith.constant 0 : i32
    %c0_i32_0 = arith.constant 0 : i32
    return %arg0, %c0_i32 : i32, i32
  }
  func.func @transform_1(%arg0: i32) -> (i32, i32) {
    %c0_i32 = arith.constant 0 : i32
    %c0_i32_0 = arith.constant 0 : i32
    return %arg0, %c0_i32 : i32, i32
  }
  func.func @transform_2(%arg0: i32) -> (i32, i32) {
    %c0_i32 = arith.constant 0 : i32
    %c0_i32_0 = arith.constant 0 : i32
    %c0_i32_1 = arith.constant 0 : i32
    return %c0_i32, %c0_i32_0 : i32, i32
  }
  func.func @transform_3(%arg0: i32) -> (i32, i32) {
    %c0_i32 = arith.constant 0 : i32
    %c0_i32_0 = arith.constant 0 : i32
    %c0_i32_1 = arith.constant 0 : i32
    return %c0_i32, %c0_i32_0 : i32, i32
  }
  func.func @transform_4(%arg0: i32) -> (i32, i32) {
    %c0_i32 = arith.constant 0 : i32
    %c0_i32_0 = arith.constant 0 : i32
    %c0_i32_1 = arith.constant 0 : i32
    return %c0_i32, %c0_i32_0 : i32, i32
  }
  func.func @transform_5(%arg0: i32) -> (i32, i32) {
    %c0_i32 = arith.constant 0 : i32
    %c0_i32_0 = arith.constant 0 : i32
    %c0_i32_1 = arith.constant 0 : i32
    return %c0_i32, %c0_i32_0 : i32, i32
  }
  func.func @transform_6(%arg0: i32) -> (i32, i32) {
    %c0_i32 = arith.constant 0 : i32
    %c0_i32_0 = arith.constant 0 : i32
    %c0_i32_1 = arith.constant 0 : i32
    return %c0_i32, %c0_i32_0 : i32, i32
  }
  func.func @transform_7(%arg0: i32) -> (i32, i32) {
    %c0_i32 = arith.constant 0 : i32
    %c0_i32_0 = arith.constant 0 : i32
    %c0_i32_1 = arith.constant 0 : i32
    return %c0_i32, %c0_i32_0 : i32, i32
  }
  func.func @transform_8(%arg0: i32) -> (i32, i32) {
    %c0_i32 = arith.constant 0 : i32
    %c0_i32_0 = arith.constant 0 : i32
    %c0_i32_1 = arith.constant 0 : i32
    return %c0_i32, %c0_i32_0 : i32, i32
  }
  func.func @transform_9(%arg0: i32) -> (i32, i32) {
    %c0_i32 = arith.constant 0 : i32
    %c0_i32_0 = arith.constant 0 : i32
    %c0_i32_1 = arith.constant 0 : i32
    return %c0_i32, %c0_i32_0 : i32, i32
  }
  func.func @transform_10(%arg0: i32) -> (i32, i32) {
    %c0_i32 = arith.constant 0 : i32
    %c0_i32_0 = arith.constant 0 : i32
    %c0_i32_1 = arith.constant 0 : i32
    return %c0_i32, %c0_i32_0 : i32, i32
  }
  func.func @transform_11(%arg0: i32) -> (i32, i32) {
    %c0_i32 = arith.constant 0 : i32
    %c0_i32_0 = arith.constant 0 : i32
    %c0_i32_1 = arith.constant 0 : i32
    return %c0_i32, %c0_i32_0 : i32, i32
  }
  func.func @transform_12(%arg0: i32) -> (i32, i32) {
    %c0_i32 = arith.constant 0 : i32
    %c0_i32_0 = arith.constant 0 : i32
    %c0_i32_1 = arith.constant 0 : i32
    return %c0_i32, %c0_i32_0 : i32, i32
  }
  func.func @transform_13(%arg0: i32) -> (i32, i32) {
    %c0_i32 = arith.constant 0 : i32
    %c0_i32_0 = arith.constant 0 : i32
    %c0_i32_1 = arith.constant 0 : i32
    return %c0_i32, %c0_i32_0 : i32, i32
  }
  func.func @transform_14(%arg0: i32) -> (i32, i32) {
    %c0_i32 = arith.constant 0 : i32
    %c0_i32_0 = arith.constant 0 : i32
    %c0_i32_1 = arith.constant 0 : i32
    return %c0_i32, %c0_i32_0 : i32, i32
  }
  func.func @transform_15(%arg0: i32) -> (i32, i32) {
    %c0_i32 = arith.constant 0 : i32
    %c0_i32_0 = arith.constant 0 : i32
    return %arg0, %c0_i32 : i32, i32
  }
}

</mosaic_0001>

<bundles_post_ra>
// kernel: tpu_custom_call.1
= control target key start
LH: loop header
LB: loop body
LE: loop exit
PB: predicated region body
PF: predicated region fallthrough
CT: control target
= control target key end

     0   :  { %20 = vsyncpa [#allocation3], 0  ;;  %s1268_s0 = inlined_call_operand.hbm [shape: f32[8,16], index: 0, kind: input, shape index: {}]   ;;  %s1269_s1 = inlined_call_operand.hbm [shape: f32[8,16], index: 1, kind: input, shape index: {}]   ;;  %s1270_s2 = inlined_call_operand.vmem [shape: f32[16,16], index: 2, kind: input, shape index: {}]   ;;  %s1271_s3 = inlined_call_operand.hbm [shape: f32[16,16], index: 3, kind: input, shape index: {}]   ;;  %s1272_s4 = inlined_call_operand.hbm [shape: f32[1,16], index: 4, kind: input, shape index: {}]   ;;  %s1273_s5 = inlined_call_operand.vmem [shape: f32[16,16], index: 5, kind: input, shape index: {}]   ;;  %s1274_s6 = inlined_call_operand.hbm [shape: f32[1,16], index: 6, kind: input, shape index: {}]   ;;  %s1275_s7 = inlined_call_operand.hbm [shape: f32[16,16], index: 7, kind: input, shape index: {}]   ;;  %s1276_s8 = inlined_call_operand.hbm [shape: f32[1,16], index: 8, kind: input, shape index: {}]   ;;  %s1277_s9 = inlined_call_operand.hbm [shape: f32[16,16], index: 9, kind: input, shape index: {}]   ;;  %s1278_s10 = inlined_call_operand.vmem [shape: f32[1,16], index: 10, kind: input, shape index: {}]   ;;  %s1279_s11 = inlined_call_operand.hbm [shape: f32[16,16], index: 11, kind: input, shape index: {}]   ;;  %s1280_s12 = inlined_call_operand.vmem [shape: f32[1,16], index: 12, kind: input, shape index: {}]   ;;  %s1281_s13 = inlined_call_operand.vmem [shape: f32[16,8], index: 13, kind: input, shape index: {}]   ;;  %s1282_s14 = inlined_call_operand.vmem [shape: f32[1,8], index: 14, kind: input, shape index: {}]   ;;  %s1283_s15 = inlined_call_operand.hbm [shape: f32[8,8], index: 15, kind: output, shape index: {}]  }
   0x1   :  { %21 = vsyncpa [#allocation6], 0 }
   0x2   :  { %22 = vsyncpa [#allocation9], 0 }
   0x3   :  { %23 = vsyncpa [#allocation12], 0 }
   0x4   :  { %24 = vsyncpa [#allocation15], 0 }
   0x5   :  { %25 = vsyncpa [#allocation4], 0  ;;  %s1070_s18 = smov [#allocation5]   ;;  %s1071_s20 = smov [#allocation8]  }
   0x6   :  { %s42_s19 = sshll.u32 %s1070_s18, 4  ;;  %s66_s21 = sshll.u32 %s1071_s20, 4  ;;  %s43_s19 = int_to_ptr.vmem [resolvable:$true] %s42_s19  ;;  %s67_s21 = int_to_ptr.vmem [resolvable:$true] %s66_s21 }
   0x7   :  { %s866_s22 = scalar_lea.vmem %s43_s19, 128  ;;  %p871_p1 = scmp.lt.s32.totalorder %s43_s19, %s43_s19 }
   0x8   :  { %p867_p0 = scmp.ne.s32.totalorder %s43_s19, %s866_s22  ;;  %p872_p2 = scmp.lt.s32.totalorder %s866_s22, %s866_s22 }
   0xa   :  { %p873_p3 = por %p872_p2, %p871_p1 }
   0xc   :  { %p874_p4 = pnand %p873_p3, %p867_p0 }
   0xe   :  { %877 = shalt.err (!%p874_p4)
}
   0xf   :  { %45 = dma.hbm_to_vmem [thread:$0]  %s1269_s1, 128, %s43_s19, [#allocation6]  }
  0x10   :  { %s886_s25 = scalar_lea.vmem %s67_s21, 16  ;;  %s890_s26 = scalar_lea.vmem %s67_s21, 32 }
  0x11   :  { %p887_p5 = scmp.ne.s32.totalorder %s67_s21, %s886_s25  ;;  %p891_p6 = scmp.lt.s32.totalorder %s67_s21, %s67_s21 }
  0x12   :  { %p892_p7 = scmp.lt.s32.totalorder %s890_s26, %s886_s25 }
  0x14   :  { %p893_p8 = por %p892_p7, %p891_p6 }
  0x16   :  { %p894_p9 = pnand %p893_p8, %p887_p5 }
  0x18   :  { %897 = shalt.err (!%p894_p9)
}
  0x19   :  { %69 = dma.hbm_to_vmem [thread:$0]  %s1272_s4, 16, %s67_s21, [#allocation9]  }
  0x1a   :  { %s1072_s29 = smov [#allocation11]   ;;  %s1073_s16 = smov [#allocation14]  }
  0x1b   :  { %s87_s30 = sshll.u32 %s1072_s29, 4  ;;  %s109_s17 = sshll.u32 %s1073_s16, 4  ;;  %s88_s30 = int_to_ptr.vmem [resolvable:$true] %s87_s30  ;;  %s110_s17 = int_to_ptr.vmem [resolvable:$true] %s109_s17 }
  0x1c   :  { %s906_s18 = scalar_lea.vmem %s88_s30, 256  ;;  %p911_p11 = scmp.lt.s32.totalorder %s88_s30, %s88_s30 }
  0x1d   :  { %p907_p10 = scmp.ne.s32.totalorder %s88_s30, %s906_s18  ;;  %p912_p12 = scmp.lt.s32.totalorder %s906_s18, %s906_s18 }
  0x1f   :  { %p913_p13 = por %p912_p12, %p911_p11 }
  0x21   :  { %p914_p0 = pnand %p913_p13, %p907_p10 }
  0x23   :  { %917 = shalt.err (!%p914_p0)
}
  0x24   :  { %s1074_s1 = smov 128   ;;  %s1075_s19 = smov 8  }
  0x25   :  { %93 = dma.hbm_to_vmem [thread:$0]  %s1275_s7, 256, %s88_s30, [#allocation12], %s1074_s1, %s1074_s1, %s1075_s19  }
  0x26   :  { %s926_s21 = scalar_lea.vmem %s110_s17, 256  ;;  %p931_p2 = scmp.lt.s32.totalorder %s110_s17, %s110_s17 }
  0x27   :  { %p927_p1 = scmp.ne.s32.totalorder %s110_s17, %s926_s21  ;;  %p932_p3 = scmp.lt.s32.totalorder %s926_s21, %s926_s21 }
  0x29   :  { %p933_p4 = por %p932_p3, %p931_p2 }
  0x2b   :  { %p934_p5 = pnand %p933_p4, %p927_p1 }
  0x2d   :  { %937 = shalt.err (!%p934_p5)
}
  0x2e   :  { %115 = dma.hbm_to_vmem [thread:$0]  %s1277_s9, 256, %s110_s17, [#allocation15], %s1074_s1, %s1074_s1, %s1075_s19  }
  0x2f   :  { %s1076_s24 = smov [#allocation2]   ;;  %s1077_s26 = smov [#allocation7]  }
  0x30   :  { %s32_s25 = sshll.u32 %s1076_s24, 4  ;;  %s53_s27 = sshll.u32 %s1077_s26, 4  ;;  %s33_s25 = int_to_ptr.vmem [resolvable:$true] %s32_s25  ;;  %s54_s27 = int_to_ptr.vmem [resolvable:$true] %s53_s27 }
  0x31   :  { %s946_s7 = scalar_lea.vmem %s33_s25, 128  ;;  %p951_p7 = scmp.lt.s32.totalorder %s33_s25, %s33_s25 }
  0x32   :  { %p947_p6 = scmp.ne.s32.totalorder %s33_s25, %s946_s7  ;;  %p952_p8 = scmp.lt.s32.totalorder %s946_s7, %s946_s7 }
  0x34   :  { %p953_p9 = por %p952_p8, %p951_p7 }
  0x36   :  { %p954_p10 = pnand %p953_p9, %p947_p6 }
  0x38   :  { %957 = shalt.err (!%p954_p10)
}
  0x39   :  { %35 = dma.hbm_to_vmem [thread:$0]  %s1268_s0, 128, %s33_s25, [#allocation3]  }
  0x3a   :  { %s966_s30 = scalar_lea.vmem %s54_s27, 256  ;;  %p971_p12 = scmp.lt.s32.totalorder %s54_s27, %s54_s27 }
  0x3b   :  { %p967_p11 = scmp.ne.s32.totalorder %s54_s27, %s966_s30  ;;  %p972_p13 = scmp.lt.s32.totalorder %s966_s30, %s966_s30 }
  0x3d   :  { %p973_p0 = por %p972_p13, %p971_p12 }
  0x3f   :  { %p974_p1 = pnand %p973_p0, %p967_p11 }
  0x41   :  { %977 = shalt.err (!%p974_p1)
}
  0x42   :  { %59 = dma.hbm_to_vmem [thread:$0]  %s1271_s3, 256, %s54_s27, [#allocation6], %s1074_s1, %s1074_s1, %s1075_s19  }
  0x43   :  { %s1078_s17 = smov [#allocation10]   ;;  %s1079_s20 = smov [#allocation13]  }
  0x44   :  { %s78_s18 = sshll.u32 %s1078_s17, 4  ;;  %s100_s4 = sshll.u32 %s1079_s20, 4  ;;  %s79_s18 = int_to_ptr.vmem [resolvable:$true] %s78_s18  ;;  %s101_s4 = int_to_ptr.vmem [resolvable:$true] %s100_s4 }
  0x45   :  { %s986_s0 = scalar_lea.vmem %s79_s18, 16  ;;  %s990_s21 = scalar_lea.vmem %s79_s18, 32 }
  0x46   :  { %p987_p2 = scmp.ne.s32.totalorder %s79_s18, %s986_s0  ;;  %p991_p3 = scmp.lt.s32.totalorder %s79_s18, %s79_s18 }
  0x47   :  { %p992_p4 = scmp.lt.s32.totalorder %s990_s21, %s986_s0 }
  0x49   :  { %p993_p5 = por %p992_p4, %p991_p3 }
  0x4b   :  { %p994_p6 = pnand %p993_p5, %p987_p2 }
  0x4d   :  { %997 = shalt.err (!%p994_p6)
}
  0x4e   :  { %81 = dma.hbm_to_vmem [thread:$0]  %s1274_s6, 16, %s79_s18, [#allocation9]  }
  0x4f   :  { %s1006_s24 = scalar_lea.vmem %s101_s4, 16  ;;  %s1010_s3 = scalar_lea.vmem %s101_s4, 32 }
  0x50   :  { %p1007_p7 = scmp.ne.s32.totalorder %s101_s4, %s1006_s24  ;;  %p1011_p8 = scmp.lt.s32.totalorder %s101_s4, %s101_s4 }
  0x51   :  { %p1012_p9 = scmp.lt.s32.totalorder %s1010_s3, %s1006_s24 }
  0x53   :  { %p1013_p10 = por %p1012_p9, %p1011_p8 }
  0x55   :  { %p1014_p11 = pnand %p1013_p10, %p1007_p7 }
  0x57   :  { %1017 = shalt.err (!%p1014_p11)
}
  0x58   :  { %103 = dma.hbm_to_vmem [thread:$0]  %s1276_s8, 16, %s101_s4, [#allocation12]  }
  0x59   :  { %s1080_s27 = smov [#allocation16]  }
  0x5a   :  { %s123_s7 = sshll.u32 %s1080_s27, 4  ;;  %s124_s7 = int_to_ptr.vmem [resolvable:$true] %s123_s7 }
  0x5b   :  { %s1026_s28 = scalar_lea.vmem %s124_s7, 256  ;;  %p1031_p13 = scmp.lt.s32.totalorder %s124_s7, %s124_s7 }
  0x5c   :  { %p1027_p12 = scmp.ne.s32.totalorder %s124_s7, %s1026_s28  ;;  %p1032_p0 = scmp.lt.s32.totalorder %s1026_s28, %s1026_s28 }
  0x5e   :  { %p1033_p1 = por %p1032_p0, %p1031_p13 }
  0x60   :  { %p1034_p2 = pnand %p1033_p1, %p1027_p12 }
  0x62   :  { %1037 = shalt.err (!%p1034_p2)
}
  0x63   :  { %129 = dma.hbm_to_vmem [thread:$0]  %s1279_s11, 256, %s124_s7, [#allocation15], %s1074_s1, %s1074_s1, %s1075_s19  }
  0x64   :  { %1058 = dma.done.wait [#allocation3], 128  }
  0x65   :  { %1059 = vsyncadd [#allocation3], 4294967168 }
  0x66   :  { %1060 = dma.done.wait [#allocation6], 384  }
  0x67   :  { %1061 = vsyncadd [#allocation6], 4294966912 }
  0x68   :  { %1062 = dma.done.wait [#allocation9], 32  }
  0x69   :  { %1063 = vsyncadd [#allocation9], 4294967264 }
  0x6a   :  { %1064 = dma.done.wait [#allocation12], 272  }
  0x6b   :  { %1065 = vsyncadd [#allocation12], 4294967024 }
  0x6c   :  { %1066 = dma.done.wait [#allocation15], 512  }
  0x6d   :  { %1067 = vsyncadd [#allocation15], 4294966784  ;;  %v1081_v0 = vmov 0.0   ;;  %vm1082_vm0 = vmmov 0   ;;  %v168_v1 = vld [vmem:[#allocation7 + $0x8] sm:$0xff]  ;;  %v165_v2 = vld [vmem:[%s1270_s2 + $0x8] sm:$0xff] }
  0x6e   :  { %795 = vmatprep.subr.mxu0 %v1081_v0  ;;  %802 = vmatprep.subr.mxu1 %v1081_v0  ;;  %v167_v3 = vld [vmem:[#allocation7] sm:$0xff]  ;;  %v164_v4 = vld [vmem:[%s1270_s2] sm:$0xff]  ;;  %v166_v5 = vld [vmem:[#allocation5] sm:$0xff]  ;;  %vm169_vm1 = vcmask 130048   ;;  %s1083_s24 = smov [#allocation17]   ;;  %vm740_vm2 = vcmask 64512  }
  0x6f   :  { %799 = vmatprep.mubr.msk.f32.mxu0 %vm1082_vm0, %v1081_v0  ;;  %806 = vmatprep.mubr.msk.f32.mxu1 %vm1082_vm0, %v1081_v0  ;;  %v163_v6 = vld [vmem:[#allocation2] sm:$0xff]  ;;  %v325_v7 = vld [vmem:[%s1273_s5 + $0x8] sm:$0xff]  ;;  %v491_v24 = vld [vmem:[#allocation14] sm:$0xff]  ;;  %s748_s3 = sshll.u32 %s1083_s24, 4  ;;  %s749_s3 = int_to_ptr.vmem [resolvable:$true] %s748_s3 }
  0x70   :  { %796 = vmatpush3.msra.mxu0 %v168_v1  ;;  %803 = vmatpush3.msra.mxu1 %v165_v2  ;;  %v324_v8 = vld [vmem:[%s1273_s5] sm:$0xff]  ;;  %v408_v16 = vld [vmem:[#allocation11 + $0x8] sm:$0xff]  ;;  %v766_v25 = vld [vmem:[#allocation13] ss:$0 sm:$0xff]  ;;  %p1043_p4 = scmp.lt.s32.totalorder %s749_s3, %s749_s3 }
  0x71   :  { %797 = vmatprep.subr.mxu0 %v1081_v0  ;;  %804 = vmatprep.subr.mxu1 %v1081_v0  ;;  %v763_v11 = vld [vmem:[#allocation8] ss:$0 sm:$0xff]  ;;  %v407_v17 = vld [vmem:[#allocation11] sm:$0xff]  ;;  %v764_v18 = vld [vmem:[#allocation10] ss:$0 sm:$0xff] }
  0x72   :  { %798 = vmatpush3.msra.mxu0 %v167_v3  ;;  %805 = vmatpush3.msra.mxu1 %v164_v4  ;;  %v492_v23 = vld [vmem:[#allocation14 + $0x8] sm:$0xff]  ;;  %v575_v31 = vld [vmem:[#allocation16 + $0x8] sm:$0xff]  ;;  %v574_v32 = vld [vmem:[#allocation16] sm:$0xff] }
  0x73   :  { %800 = vmatmul.mubr.msk.f32.vlgmr.msra.gmra.mxu0 %vm169_vm1, %v166_v5  ;;  %807 = vmatmul.mubr.msk.f32.vlgmr.msra.gmra.mxu1 %vm169_vm1, %v163_v6  ;;  %v768_v33 = vld [vmem:[%s1278_s10] ss:$0 sm:$0xff]  ;;  %v659_v38 = vld [vmem:[%s1281_s13 + $0x8] sm:$0xff] }
  0x74   :  { %809 = vmatprep.subr.mxu0 %v1081_v0  ;;  %813 = vmatprep.mubr.msk.f32.mxu0 %vm1082_vm0, %v1081_v0  ;;  %v658_v39 = vld [vmem:[%s1281_s13] sm:$0xff] }
  0x75   :  { %816 = vmatprep.subr.mxu1 %v1081_v0  ;;  %820 = vmatprep.mubr.msk.f32.mxu1 %vm1082_vm0, %v1081_v0  ;;  %v770_v40 = vld [vmem:[%s1280_s12] ss:$0 sm:$0xff]  ;;  %s1038_s12 = scalar_lea.vmem %s749_s3, 128 }
  0x76   :  { %810 = vmatpush3.msra.mxu0 %v325_v7  ;;  %817 = vmatpush3.msra.mxu1 %v408_v16  ;;  %v772_v46 = vld [vmem:[%s1282_s14] ss:$0 sm:$0xff]  ;;  %p1039_p3 = scmp.ne.s32.totalorder %s749_s3, %s1038_s12  ;;  %p1044_p5 = scmp.lt.s32.totalorder %s1038_s12, %s1038_s12 }
  0x77   :  { %811 = vmatprep.subr.mxu0 %v1081_v0  ;;  %818 = vmatprep.subr.mxu1 %v1081_v0 }
  0x78   :  { %812 = vmatpush3.msra.mxu0 %v324_v8  ;;  %819 = vmatpush3.msra.mxu1 %v407_v17  ;;  %p1045_p6 = por %p1044_p5, %p1043_p4 }
  0x79   :  { %823 = vmatprep.subr.mxu0 %v1081_v0  ;;  %830 = vmatprep.subr.mxu1 %v1081_v0 }
  0x7a   :  { %p1046_p7 = pnand %p1045_p6, %p1039_p3 }
 0x133   :  { %v239_v9 = vpop.f32.mrf.mxu0  ;;  %v312_v10 = vpop.f32.mrf.mxu1 }
 0x134   :  { %v313_v12 = vadd.f32 %v312_v10, %v239_v9 }
 0x135   :  { %v801_v13 = vpop.f32.mrf.mxu0  ;;  %v808_v14 = vpop.f32.mrf.mxu1 }
 0x136   :  { %v323_v15 = vadd.f32 %v763_v11, %v313_v12 }
 0x138   :  { %814 = vmatmul.mubr.msk.f32.vlgmr.msra.gmra.mxu0 %vm169_vm1, %v323_v15 }
 0x139   :  { %827 = vmatprep.mubr.msk.f32.mxu0 %vm1082_vm0, %v1081_v0  ;;  %824 = vmatpush3.msra.mxu0 %v492_v23 }
 0x13a   :  { %825 = vmatprep.subr.mxu0 %v1081_v0 }
 0x13b   :  { %826 = vmatpush3.msra.mxu0 %v491_v24 }
 0x13c   :  { %837 = vmatprep.subr.mxu0 %v1081_v0 }
 0x1f8   :  { %v402_v19 = vpop.f32.mrf.mxu0 }
 0x1f9   :  { %v403_v20 = vadd.f32 %v764_v18, %v402_v19 }
 0x1fa   :  { %v815_v21 = vpop.f32.mrf.mxu0 }
 0x1fb   :  { %v406_v22 = vmax.f32 %v403_v20, 0.0 }
 0x1fd   :  { %821 = vmatmul.mubr.msk.f32.vlgmr.msra.gmra.mxu1 %vm169_vm1, %v406_v22 }
 0x1fe   :  { %834 = vmatprep.mubr.msk.f32.mxu1 %vm1082_vm0, %v1081_v0  ;;  %831 = vmatpush3.msra.mxu1 %v575_v31 }
 0x1ff   :  { %832 = vmatprep.subr.mxu1 %v1081_v0 }
 0x200   :  { %833 = vmatpush3.msra.mxu1 %v574_v32 }
 0x2bd   :  { %v485_v26 = vpop.f32.mrf.mxu1 }
 0x2be   :  { %v486_v27 = vadd.f32 %v766_v25, %v485_v26 }
 0x2bf   :  { %v822_v28 = vpop.f32.mrf.mxu1 }
 0x2c0   :  { %v489_v29 = vmax.f32 %v486_v27, 0.0 }
 0x2c2   :  { %v490_v30 = vadd.f32 %v489_v29, %v323_v15 }
 0x2c4   :  { %828 = vmatmul.mubr.msk.f32.vlgmr.msra.gmra.mxu0 %vm169_vm1, %v490_v30 }
 0x2c5   :  { %841 = vmatprep.mubr.msk.f32.mxu0 %vm1082_vm0, %v1081_v0  ;;  %838 = vmatpush3.msra.mxu0 %v659_v38 }
 0x2c6   :  { %839 = vmatprep.subr.mxu0 %v1081_v0 }
 0x2c7   :  { %840 = vmatpush3.msra.mxu0 %v658_v39 }
 0x384   :  { %v569_v34 = vpop.f32.mrf.mxu0 }
 0x385   :  { %v570_v35 = vadd.f32 %v768_v33, %v569_v34 }
 0x386   :  { %v829_v36 = vpop.f32.mrf.mxu0 }
 0x387   :  { %v573_v37 = vmax.f32 %v570_v35, 0.0 }
 0x389   :  { %835 = vmatmul.mubr.msk.f32.vlgmr.msra.gmra.mxu1 %vm169_vm1, %v573_v37 }
 0x449   :  { %v652_v41 = vpop.f32.mrf.mxu1 }
 0x44a   :  { %v653_v42 = vadd.f32 %v770_v40, %v652_v41 }
 0x44b   :  { %v836_v43 = vpop.f32.mrf.mxu1 }
 0x44c   :  { %v656_v44 = vmax.f32 %v653_v42, 0.0 }
 0x44e   :  { %v657_v45 = vadd.f32 %v656_v44, %v490_v30 }
 0x450   :  { %842 = vmatmul.mubr.msk.f32.vlgmr.msra.gmra.mxu0 %vm169_vm1, %v657_v45 }
 0x510   :  { %v736_v47 = vpop.f32.mrf.mxu0 }
 0x511   :  { %v737_v48 = vadd.f32 %v772_v46, %v736_v47 }
 0x512   :  { %v843_v49 = vpop.f32.mrf.mxu0 }
 0x513   :  { %741 = vst.msk [vmem:[#allocation17] sm:$0xff] %vm740_vm2, %v737_v48 }
 0x514   :  { %1049 = shalt.err (!%p1046_p7)
}
 0x515   :  { %751 = dma.vmem_to_hbm [thread:$0]  %s749_s3, 128, %s1283_s15, [#allocation4]  }
 0x516   :  { %1068 = dma.done.wait [#allocation4], 128  }
 0x517   :  { %1069 = vsyncadd [#allocation4], 4294967168 }
 0x518   :  { %755 = vsyncpa [#allocation3], 1 }
 0x519   :  { %756 = vsyncpa [#allocation6], 1 }
 0x51a   :  { %757 = vsyncpa [#allocation9], 1 }
 0x51b   :  { %758 = vsyncpa [#allocation12], 1 }
 0x51c   :  { %759 = vsyncpa [#allocation15], 1 }
 0x51d   :  { %760 = vsyncpa [#allocation4], 1 }

</bundles_post_ra>
